<compile_context>
chip_gen: v7x
topology: tpu7x:2x2x1
jax: 0.10.0
libtpu: 0.0.40
codegen_flags: <defaults>
</compile_context>

<pallas_src>
import functools

import jax
import jax.numpy as jnp
from jax.experimental import pallas as pl
from jax.experimental.pallas import tpu as pltpu

# ---- config (standard molecular-graph config values) ----
NUM_ATOM_TYPE = 120
NUM_CHIRALITY_TAG = 3
NUM_BOND_TYPE = 6
NUM_BOND_DIRECTION = 3
BN_EPS = 1e-5


def _round_up(x, m):
    return (x + m - 1) // m * m


def _vmem_budget_bytes():
    """Generation-aware VMEM cap: ~80% of physical capacity (headroom left for Mosaic
    internal scratch / pipeline buffers).  ~51 MiB on v7x, ~102 MiB on v5e/v6e.
    Falls back to a conservative 48 MiB if the query is unavailable."""
    try:
        cap = int(getattr(pltpu.get_tpu_info(), "vmem_capacity_bytes", 0))
    except Exception:
        cap = 0
    if cap <= 0:
        return 48 << 20
    return int(cap * 0.8)


# --------------------- Pallas kernel: one GCN layer per grid step ---------------------
def gcn_layer_kernel(h0_ref, a_ref, w_ref, b_ref, eb_ref, g_ref, bt_ref,
                     out_ref, h_ref, *, num_layer, n_real, eps, jk):
    """grid=(num_layer,).  h0/A_hat/out are resident (constant block index); W/b/eb/gamma/beta
    are streamed per layer; h_ref is a persistent bf16 VMEM scratch carrying h across layers.

    h0_ref : [Np, Dp] f32      a_ref : [Np, Np] bf16
    w_ref  : [1, Dp, Dp] bf16  b_ref : [1, 1, Dp] f32   eb_ref : [1, Np, Dp] bf16
    g_ref/bt_ref : [1, 1, Dp] f32
    out_ref: [Np, Dp] f32      h_ref : [Np, Dp] bf16 (scratch)
    """
    l = pl.program_id(0)
    np_pad = h0_ref.shape[0]

    @pl.when(l == 0)
    def _init():
        h_ref[...] = h0_ref[...].astype(jnp.bfloat16)

    inv_n = jnp.float32(1.0 / n_real)
    row_ids = jax.lax.broadcasted_iota(jnp.int32, (np_pad, 1), 0)
    row_mask = (row_ids < n_real).astype(jnp.float32)

    # linear: x_lin = h @ W^T + b          (MXU, bf16 operands, f32 accumulate)
    x_lin = jnp.dot(h_ref[...], w_ref[0],
                    preferred_element_type=jnp.float32) + b_ref[0]
    # message passing: agg = A_hat @ x_lin + edge_bias
    agg = jnp.dot(a_ref[...], x_lin.astype(jnp.bfloat16),
                  preferred_element_type=jnp.float32) + eb_ref[0].astype(jnp.float32)

    # BatchNorm1d (training-mode batch statistics, biased variance, affine), f32.
    # Padded rows of agg are exactly 0 (A_hat padded rows/cols and eb padded rows are
    # zero), so the plain column sum is already the sum over real rows; row_mask only
    # guards the centered square term.
    mean = jnp.sum(agg, axis=0, keepdims=True) * inv_n
    c = agg - mean
    var = jnp.sum((c * row_mask) ** 2, axis=0, keepdims=True) * inv_n
    hn = c * jax.lax.rsqrt(var + eps) * g_ref[0] + bt_ref[0]

    is_last = l == num_layer - 1

    # carry for the next layer: relu (+ dropout p=0 identity) on non-final layers, bf16.
    @pl.when(l < num_layer - 1)
    def _carry():
        h_ref[...] = jnp.maximum(hn, 0.0).astype(jnp.bfloat16)

    if jk == "last":
        @pl.when(is_last)
        def _store():
            out_ref[...] = hn
    else:
        # per-layer value appended to h_list: post-relu except on the last layer
        hl = jnp.where(is_last, hn, jnp.maximum(hn, 0.0))
        if jk == "sum":
            @pl.when(l == 0)
            def _s0():
                out_ref[...] = hl

            @pl.when(l > 0)
            def _sacc():
                out_ref[...] = out_ref[...] + hl
        elif jk == "max":
            @pl.when(l == 0)
            def _m0():
                out_ref[...] = hl

            @pl.when(l > 0)
            def _macc():
                out_ref[...] = jnp.maximum(out_ref[...], hl)
        else:
            raise ValueError(f"unsupported jk mode: {jk}")


def fused_gcn(h0, a_hat, w_s, b_s, eb_s, g_s, bt_s, *, num_layer, n_real, jk):
    np_pad, dp = h0.shape
    vmem_budget = _vmem_budget_bytes()

    # Resident VMEM: h0 + A_hat + h carry + output + 2x double-buffered per-layer stream.
    resident = (np_pad * dp * 4 + np_pad * np_pad * 2 + np_pad * dp * 2 + np_pad * dp * 4
                + 2 * (dp * dp * 2 + np_pad * dp * 2 + 3 * dp * 4))
    if resident + (4 << 20) > vmem_budget:
        # TODO(synk): beyond this size, node-row tile A_hat via an extra ("parallel") grid
        # axis (also engages the 2nd v7x TensorCore) or switch to a sparse
        # PrefetchScalarGridSpec gather formulation instead of the dense A_hat design.
        raise ValueError(
            f"dense A_hat design needs ~{resident / 2**20:.1f} MiB of VMEM, exceeding the "
            f"{vmem_budget / 2**20:.1f} MiB budget for this TPU generation")

    kernel = functools.partial(gcn_layer_kernel, num_layer=num_layer,
                               n_real=n_real, eps=BN_EPS, jk=jk)

    arrays = (h0, a_hat, w_s, b_s, eb_s, g_s, bt_s)
    bytes_in = int(sum(int(x.size) * x.dtype.itemsize for x in arrays))
    bytes_out = int(np_pad * dp * 4)
    flops = int(2 * num_layer * (np_pad * dp * dp + np_pad * np_pad * dp))

    return pl.pallas_call(
        kernel,
        out_shape=jax.ShapeDtypeStruct((np_pad, dp), jnp.float32),
        grid_spec=pltpu.PrefetchScalarGridSpec(
            num_scalar_prefetch=0,
            grid=(num_layer,),
            in_specs=[
                pl.BlockSpec((np_pad, dp), lambda l: (0, 0)),        # h0      (resident)
                pl.BlockSpec((np_pad, np_pad), lambda l: (0, 0)),    # A_hat   (resident)
                pl.BlockSpec((1, dp, dp), lambda l: (l, 0, 0)),      # W^T     (streamed)
                pl.BlockSpec((1, 1, dp), lambda l: (l, 0, 0)),       # b       (streamed)
                pl.BlockSpec((1, np_pad, dp), lambda l: (l, 0, 0)),  # eb      (streamed)
                pl.BlockSpec((1, 1, dp), lambda l: (l, 0, 0)),       # gamma   (streamed)
                pl.BlockSpec((1, 1, dp), lambda l: (l, 0, 0)),       # beta    (streamed)
            ],
            out_specs=pl.BlockSpec((np_pad, dp), lambda l: (0, 0)),  # single jk output
            scratch_shapes=[pltpu.VMEM((np_pad, dp), jnp.bfloat16)],  # loop-carried h
        ),
        compiler_params=pltpu.CompilerParams(
            dimension_semantics=("arbitrary",),
            vmem_limit_bytes=int(vmem_budget)),
        cost_estimate=pl.CostEstimate(flops=flops,
                                      transcendentals=int(num_layer * dp),
                                      bytes_accessed=bytes_in + bytes_out),
    )(h0, a_hat, w_s, b_s, eb_s, g_s, bt_s)


# --------------------- parameter init (deterministic, synthetic) ---------------------
def xavier_uniform(key, shape):
    fan_in, fan_out = shape[0], shape[1]
    bound = jnp.sqrt(6.0 / (fan_in + fan_out))
    return jax.random.uniform(key, shape, jnp.float32, -bound, bound)


def init_params(key, num_layer, emb_dim):
    keys = jax.random.split(key, 2 + num_layer * 4)
    params = {
        "x_emb1": xavier_uniform(keys[0], (NUM_ATOM_TYPE, emb_dim)),
        "x_emb2": xavier_uniform(keys[1], (NUM_CHIRALITY_TAG, emb_dim)),
        "layers": [],
    }
    for l in range(num_layer):
        k0, k1, k2, k3 = keys[2 + 4 * l:2 + 4 * (l + 1)]
        lim = 1.0 / jnp.sqrt(emb_dim)
        layer = {
            "W": jax.random.uniform(k0, (emb_dim, emb_dim), jnp.float32, -lim, lim),
            "b": jax.random.uniform(k1, (emb_dim,), jnp.float32, -lim, lim),
            "edge_emb1": xavier_uniform(k2, (NUM_BOND_TYPE, emb_dim)),
            "edge_emb2": xavier_uniform(k3, (NUM_BOND_DIRECTION, emb_dim)),
            "bn_gamma": jnp.ones((emb_dim,), jnp.float32),
            "bn_beta": jnp.zeros((emb_dim,), jnp.float32),
        }
        params["layers"].append(layer)
    return params


# --------------------- GNN forward (glue in JAX, hot path in one Pallas kernel) ---------------------
def gnn_forward(params, x, edge_index, edge_attr, *, num_layer, jk="last"):
    """x: [N, 2] int32 (atom type, chirality); edge_index: [2, E] int32;
    edge_attr: [E, 2] int32 (bond type, bond direction)."""
    if num_layer < 2:
        raise ValueError("Number of GNN layers must be greater than 1.")
    N = x.shape[0]
    D = params["x_emb1"].shape[1]

    # node embedding lookup (glue)
    h0 = params["x_emb1"][x[:, 0]] + params["x_emb2"][x[:, 1]]             # [N, D]

    # add self loops
    self_loops = jnp.stack([jnp.arange(N, dtype=jnp.int32)] * 2, axis=0)   # [2, N]
    ei = jnp.concatenate([edge_index, self_loops], axis=1)                 # [2, E+N]
    sl_attr = jnp.concatenate(
        [jnp.full((N, 1), 4, jnp.int32), jnp.zeros((N, 1), jnp.int32)], axis=1)
    ea = jnp.concatenate([edge_attr, sl_attr], axis=0)                     # [E+N, 2]

    row, col = ei[0], ei[1]                                                # source, target

    # gcn_norm: degree from source nodes, symmetric normalization
    deg = jnp.zeros((N,), jnp.float32).at[row].add(1.0)
    deg_inv_sqrt = jnp.where(deg > 0, jax.lax.rsqrt(deg), 0.0)
    norm = deg_inv_sqrt[row] * deg_inv_sqrt[col]                           # [E+N]

    # normalized adjacency A_hat (norm folded in): A_hat[col, row] += norm
    a_hat = jnp.zeros((N, N), jnp.float32).at[col, row].add(norm)          # [N, N]

    # padding: node dim -> multiple of 128 (bf16 sublane + full MXU contraction);
    # feature dim -> multiple of 128 (lane-dense stores)
    Np = _round_up(max(N, 128), 128)
    Dp = _round_up(max(D, 128), 128)

    h0_p = jnp.pad(h0, ((0, Np - N), (0, Dp - D)))
    a_p = jnp.pad(a_hat, ((0, Np - N), (0, Np - N))).astype(jnp.bfloat16)

    w_l, b_l, eb_l, g_l, bt_l = [], [], [], [], []
    for l in range(num_layer):
        lp = params["layers"][l]
        edge_emb = lp["edge_emb1"][ea[:, 0]] + lp["edge_emb2"][ea[:, 1]]   # [E+N, D]
        # edge bias does not depend on h: precompute S @ (norm * edge_emb) once per layer
        eb = jnp.zeros((N, D), jnp.float32).at[col].add(norm[:, None] * edge_emb)
        w_l.append(jnp.pad(lp["W"].T, ((0, Dp - D), (0, Dp - D))).astype(jnp.bfloat16))
        b_l.append(jnp.pad(lp["b"], (0, Dp - D)).reshape(1, Dp))
        eb_l.append(jnp.pad(eb, ((0, Np - N), (0, Dp - D))).astype(jnp.bfloat16))
        g_l.append(jnp.pad(lp["bn_gamma"], (0, Dp - D), constant_values=1.0).reshape(1, Dp))
        bt_l.append(jnp.pad(lp["bn_beta"], (0, Dp - D)).reshape(1, Dp))

    w_s = jnp.stack(w_l)          # [L, Dp, Dp] bf16
    b_s = jnp.stack(b_l)          # [L, 1, Dp]  f32
    eb_s = jnp.stack(eb_l)        # [L, Np, Dp] bf16
    g_s = jnp.stack(g_l)          # [L, 1, Dp]  f32
    bt_s = jnp.stack(bt_l)        # [L, 1, Dp]  f32

    jk_kernel = jk if jk in ("last", "sum", "max") else "last"
    # TODO(synk): jk == 'concat' (and the inclusion of the raw int input x in h_list for
    # 'sum'/'max') mixes mismatched dims in the reference; only 'last'/'sum'/'max' over the
    # float per-layer outputs are supported here.
    out = fused_gcn(h0_p, a_p, w_s, b_s, eb_s, g_s, bt_s,
                    num_layer=num_layer, n_real=N, jk=jk_kernel)           # [Np, Dp]
    return out[:N, :D]


# --------------------- demo ---------------------
if __name__ == "__main__":
    key = jax.random.PRNGKey(0)
    k_param, k_x, k_e, k_a = jax.random.split(key, 4)

    num_layer = 2
    emb_dim = 32
    N = 16     # nodes   (TODO(synk): batch multiple graphs block-diagonally to fill the MXU)
    E = 24     # directed edges

    params = init_params(k_param, num_layer, emb_dim)

    x = jnp.stack(
        [jax.random.randint(k_x, (N,), 0, NUM_ATOM_TYPE, jnp.int32),
         jax.random.randint(jax.random.fold_in(k_x, 1), (N,), 0, NUM_CHIRALITY_TAG, jnp.int32)],
        axis=1)                                                            # [N, 2]
    edge_index = jax.random.randint(k_e, (2, E), 0, N, jnp.int32)          # [2, E]
    edge_attr = jnp.stack(
        [jax.random.randint(k_a, (E,), 0, 4, jnp.int32),
         jax.random.randint(jax.random.fold_in(k_a, 1), (E,), 0, NUM_BOND_DIRECTION, jnp.int32)],
        axis=1)                                                            # [E, 2]

    out = gnn_forward(params, x, edge_index, edge_attr, num_layer=num_layer, jk="last")
    out = jax.block_until_ready(out)
    assert out.shape == (N, emb_dim) and out.dtype == jnp.float32
    assert bool(jnp.all(jnp.isfinite(out)))
    print("KERNEL_OK")
</pallas_src>

<mosaic_0001>
module attributes {stable_mosaic.version = 11 : i64} {
  func.func @gcn_layer_kernel(%arg0: i32, %arg1: memref<128x128xf32, #tpu.memory_space<vmem>>, %arg2: memref<128x128xbf16, #tpu.memory_space<vmem>>, %arg3: memref<1x128x128xbf16, #tpu.memory_space<vmem>>, %arg4: memref<1x1x128xf32, #tpu.memory_space<vmem>>, %arg5: memref<1x128x128xbf16, #tpu.memory_space<vmem>>, %arg6: memref<1x1x128xf32, #tpu.memory_space<vmem>>, %arg7: memref<1x1x128xf32, #tpu.memory_space<vmem>>, %arg8: memref<128x128xf32, #tpu.memory_space<vmem>>, %arg9: memref<128x128xbf16, #tpu.memory_space<vmem>>) attributes {dimension_semantics = [#tpu.dimension_semantics<arbitrary>], iteration_bounds = array<i64: 2>, scalar_prefetch = 0 : i64, scratch_operands = 1 : i64, tpu.core_type = #tpu.core_type<tc>, window_params = [{pipeline_mode = #tpu.pipeline_mode<synchronous>, transform_indices = @transform_0, window_bounds = array<i64: 128, 128>}, {pipeline_mode = #tpu.pipeline_mode<synchronous>, transform_indices = @transform_1, window_bounds = array<i64: 128, 128>}, {transform_indices = @transform_2, window_bounds = array<i64: 1, 128, 128>}, {transform_indices = @transform_3, window_bounds = array<i64: 1, 1, 128>}, {transform_indices = @transform_4, window_bounds = array<i64: 1, 128, 128>}, {transform_indices = @transform_5, window_bounds = array<i64: 1, 1, 128>}, {transform_indices = @transform_6, window_bounds = array<i64: 1, 1, 128>}, {pipeline_mode = #tpu.pipeline_mode<synchronous>, transform_indices = @transform_7, window_bounds = array<i64: 128, 128>}]} {
    %c0_i32 = arith.constant 0 : i32
    %0 = arith.cmpi eq, %arg0, %c0_i32 : i32
    %1 = arith.extui %0 : i1 to i32
    %c0_i32_0 = arith.constant 0 : i32
    %2 = arith.cmpi ne, %1, %c0_i32_0 : i32
    scf.if %2 {
      %c0_28 = arith.constant 0 : index
      %c0_29 = arith.constant 0 : index
      %55 = vector.load %arg1[%c0_28, %c0_29] : memref<128x128xf32, #tpu.memory_space<vmem>>, vector<128x128xf32>
      %56 = arith.truncf %55 : vector<128x128xf32> to vector<128x128xbf16>
      %c0_30 = arith.constant 0 : index
      %c0_31 = arith.constant 0 : index
      %57 = vector.load %arg9[%c0_30, %c0_31] : memref<128x128xbf16, #tpu.memory_space<vmem>>, vector<128x128xbf16>
      tpu.vector_store %arg9[%c0_30, %c0_31], %56 {strides = array<i32>} : memref<128x128xbf16, #tpu.memory_space<vmem>>, vector<128x128xbf16>,
    } else {
    }
    %3 = tpu.iota {dimensions = array<i32: 0>} : vector<128x1xi32>
    %c16_i32 = arith.constant 16 : i32
    %4 = vector.broadcast %c16_i32 : i32 to vector<128x1xi32>
    %5 = arith.cmpi slt, %3, %4 : vector<128x1xi32>
    %6 = arith.extui %5 : vector<128x1xi1> to vector<128x1xi32>
    %7 = arith.sitofp %6 : vector<128x1xi32> to vector<128x1xf32>
    %c0 = arith.constant 0 : index
    %c0_1 = arith.constant 0 : index
    %8 = vector.load %arg9[%c0, %c0_1] : memref<128x128xbf16, #tpu.memory_space<vmem>>, vector<128x128xbf16>
    %c0_2 = arith.constant 0 : index
    %c0_3 = arith.constant 0 : index
    %c0_4 = arith.constant 0 : index
    %9 = vector.load %arg3[%c0_2, %c0_3, %c0_4] : memref<1x128x128xbf16, #tpu.memory_space<vmem>>, vector<1x128x128xbf16>
    %10 = vector.shape_cast %9 : vector<1x128x128xbf16> to vector<128x128xbf16>
    %cst = arith.constant dense<0.000000e+00> : vector<128x128xf32>
    %11 = tpu.matmul %8, %10, %cst {dimension_numbers = #tpu.dot_dimension_numbers<[1], [0], [0], [1], [0, 0, 1, 1], [], []>} : vector<128x128xbf16>, vector<128x128xbf16>, vector<128x128xf32> -> vector<128x128xf32>
    %c0_5 = arith.constant 0 : index
    %c0_6 = arith.constant 0 : index
    %c0_7 = arith.constant 0 : index
    %12 = vector.load %arg4[%c0_5, %c0_6, %c0_7] : memref<1x1x128xf32, #tpu.memory_space<vmem>>, vector<1x1x128xf32>
    %13 = vector.shape_cast %12 : vector<1x1x128xf32> to vector<1x128xf32>
    %14 = vector.broadcast %13 : vector<1x128xf32> to vector<128x128xf32>
    %15 = arith.addf %11, %14 : vector<128x128xf32>
    %c0_8 = arith.constant 0 : index
    %c0_9 = arith.constant 0 : index
    %16 = vector.load %arg2[%c0_8, %c0_9] : memref<128x128xbf16, #tpu.memory_space<vmem>>, vector<128x128xbf16>
    %17 = arith.truncf %15 : vector<128x128xf32> to vector<128x128xbf16>
    %cst_10 = arith.constant dense<0.000000e+00> : vector<128x128xf32>
    %18 = tpu.matmul %16, %17, %cst_10 {dimension_numbers = #tpu.dot_dimension_numbers<[1], [0], [0], [1], [0, 0, 1, 1], [], []>} : vector<128x128xbf16>, vector<128x128xbf16>, vector<128x128xf32> -> vector<128x128xf32>
    %c0_11 = arith.constant 0 : index
    %c0_12 = arith.constant 0 : index
    %c0_13 = arith.constant 0 : index
    %19 = vector.load %arg5[%c0_11, %c0_12, %c0_13] : memref<1x128x128xbf16, #tpu.memory_space<vmem>>, vector<1x128x128xbf16>
    %20 = vector.shape_cast %19 : vector<1x128x128xbf16> to vector<128x128xbf16>
    %21 = arith.extf %20 : vector<128x128xbf16> to vector<128x128xf32>
    %22 = arith.addf %18, %21 : vector<128x128xf32>
    %cst_14 = arith.constant dense<0.000000e+00> : vector<128xf32>
    %23 = vector.multi_reduction <add>, %22, %cst_14 [0] : vector<128x128xf32> to vector<128xf32>
    %24 = vector.shape_cast %23 : vector<128xf32> to vector<1x128xf32>
    %cst_15 = arith.constant 6.250000e-02 : f32
    %25 = vector.broadcast %cst_15 : f32 to vector<1x128xf32>
    %26 = arith.mulf %24, %25 : vector<1x128xf32>
    %27 = vector.broadcast %26 : vector<1x128xf32> to vector<128x128xf32>
    %28 = arith.subf %22, %27 : vector<128x128xf32>
    %29 = vector.broadcast %7 : vector<128x1xf32> to vector<128x128xf32>
    %30 = arith.mulf %28, %29 : vector<128x128xf32>
    %31 = arith.mulf %30, %30 : vector<128x128xf32>
    %cst_16 = arith.constant dense<0.000000e+00> : vector<128xf32>
    %32 = vector.multi_reduction <add>, %31, %cst_16 [0] : vector<128x128xf32> to vector<128xf32>
    %33 = vector.shape_cast %32 : vector<128xf32> to vector<1x128xf32>
    %cst_17 = arith.constant 6.250000e-02 : f32
    %34 = vector.broadcast %cst_17 : f32 to vector<1x128xf32>
    %35 = arith.mulf %33, %34 : vector<1x128xf32>
    %cst_18 = arith.constant 9.99999974E-6 : f32
    %36 = vector.broadcast %cst_18 : f32 to vector<1x128xf32>
    %37 = arith.addf %35, %36 : vector<1x128xf32>
    %38 = math.rsqrt %37 : vector<1x128xf32>
    %39 = vector.broadcast %38 : vector<1x128xf32> to vector<128x128xf32>
    %40 = arith.mulf %28, %39 : vector<128x128xf32>
    %c0_19 = arith.constant 0 : index
    %c0_20 = arith.constant 0 : index
    %c0_21 = arith.constant 0 : index
    %41 = vector.load %arg6[%c0_19, %c0_20, %c0_21] : memref<1x1x128xf32, #tpu.memory_space<vmem>>, vector<1x1x128xf32>
    %42 = vector.shape_cast %41 : vector<1x1x128xf32> to vector<1x128xf32>
    %43 = vector.broadcast %42 : vector<1x128xf32> to vector<128x128xf32>
    %44 = arith.mulf %40, %43 : vector<128x128xf32>
    %c0_22 = arith.constant 0 : index
    %c0_23 = arith.constant 0 : index
    %c0_24 = arith.constant 0 : index
    %45 = vector.load %arg7[%c0_22, %c0_23, %c0_24] : memref<1x1x128xf32, #tpu.memory_space<vmem>>, vector<1x1x128xf32>
    %46 = vector.shape_cast %45 : vector<1x1x128xf32> to vector<1x128xf32>
    %47 = vector.broadcast %46 : vector<1x128xf32> to vector<128x128xf32>
    %48 = arith.addf %44, %47 : vector<128x128xf32>
    %c1_i32 = arith.constant 1 : i32
    %49 = arith.cmpi eq, %arg0, %c1_i32 : i32
    %c1_i32_25 = arith.constant 1 : i32
    %50 = arith.cmpi slt, %arg0, %c1_i32_25 : i32
    %51 = arith.extui %50 : i1 to i32
    %c0_i32_26 = arith.constant 0 : i32
    %52 = arith.cmpi ne, %51, %c0_i32_26 : i32
    scf.if %52 {
      %cst_28 = arith.constant 0.000000e+00 : f32
      %55 = vector.broadcast %cst_28 : f32 to vector<128x128xf32>
      %56 = arith.maximumf %48, %55 : vector<128x128xf32>
      %57 = arith.truncf %56 : vector<128x128xf32> to vector<128x128xbf16>
      %c0_29 = arith.constant 0 : index
      %c0_30 = arith.constant 0 : index
      %58 = vector.load %arg9[%c0_29, %c0_30] : memref<128x128xbf16, #tpu.memory_space<vmem>>, vector<128x128xbf16>
      tpu.vector_store %arg9[%c0_29, %c0_30], %57 {strides = array<i32>} : memref<128x128xbf16, #tpu.memory_space<vmem>>, vector<128x128xbf16>,
    } else {
    }
    %53 = arith.extui %49 : i1 to i32
    %c0_i32_27 = arith.constant 0 : i32
    %54 = arith.cmpi ne, %53, %c0_i32_27 : i32
    scf.if %54 {
      %c0_28 = arith.constant 0 : index
      %c0_29 = arith.constant 0 : index
      %55 = vector.load %arg8[%c0_28, %c0_29] : memref<128x128xf32, #tpu.memory_space<vmem>>, vector<128x128xf32>
      tpu.vector_store %arg8[%c0_28, %c0_29], %48 {strides = array<i32>} : memref<128x128xf32, #tpu.memory_space<vmem>>, vector<128x128xf32>,
    } else {
    }
    return
  }
  func.func @transform_0(%arg0: i32) -> (i32, i32) {
    %c0_i32 = arith.constant 0 : i32
    %c0_i32_0 = arith.constant 0 : i32
    %c0_i32_1 = arith.constant 0 : i32
    return %c0_i32, %c0_i32_0 : i32, i32
  }
  func.func @transform_1(%arg0: i32) -> (i32, i32) {
    %c0_i32 = arith.constant 0 : i32
    %c0_i32_0 = arith.constant 0 : i32
    %c0_i32_1 = arith.constant 0 : i32
    return %c0_i32, %c0_i32_0 : i32, i32
  }
  func.func @transform_2(%arg0: i32) -> (i32, i32, i32) {
    %c0_i32 = arith.constant 0 : i32
    %c0_i32_0 = arith.constant 0 : i32
    %c0_i32_1 = arith.constant 0 : i32
    return %arg0, %c0_i32, %c0_i32_0 : i32, i32, i32
  }
  func.func @transform_3(%arg0: i32) -> (i32, i32, i32) {
    %c0_i32 = arith.constant 0 : i32
    %c0_i32_0 = arith.constant 0 : i32
    %c0_i32_1 = arith.constant 0 : i32
    return %arg0, %c0_i32, %c0_i32_0 : i32, i32, i32
  }
  func.func @transform_4(%arg0: i32) -> (i32, i32, i32) {
    %c0_i32 = arith.constant 0 : i32
    %c0_i32_0 = arith.constant 0 : i32
    %c0_i32_1 = arith.constant 0 : i32
    return %arg0, %c0_i32, %c0_i32_0 : i32, i32, i32
  }
  func.func @transform_5(%arg0: i32) -> (i32, i32, i32) {
    %c0_i32 = arith.constant 0 : i32
    %c0_i32_0 = arith.constant 0 : i32
    %c0_i32_1 = arith.constant 0 : i32
    return %arg0, %c0_i32, %c0_i32_0 : i32, i32, i32
  }
  func.func @transform_6(%arg0: i32) -> (i32, i32, i32) {
    %c0_i32 = arith.constant 0 : i32
    %c0_i32_0 = arith.constant 0 : i32
    %c0_i32_1 = arith.constant 0 : i32
    return %arg0, %c0_i32, %c0_i32_0 : i32, i32, i32
  }
  func.func @transform_7(%arg0: i32) -> (i32, i32) {
    %c0_i32 = arith.constant 0 : i32
    %c0_i32_0 = arith.constant 0 : i32
    %c0_i32_1 = arith.constant 0 : i32
    return %c0_i32, %c0_i32_0 : i32, i32
  }
}

</mosaic_0001>

<bundles_post_ra>
// kernel: tpu_custom_call.1
= control target key start
LH: loop header
LB: loop body
LE: loop exit
PB: predicated region body
PF: predicated region fallthrough
CT: control target
= control target key end

     0   :  { %s2110_s0 = inlined_call_operand.hbm [shape: f32[128,128], index: 0, kind: input, shape index: {}]   ;;  %s2111_s1 = inlined_call_operand.hbm [shape: bf16[128,128], index: 1, kind: input, shape index: {}]   ;;  %s2112_s2 = inlined_call_operand.hbm [shape: bf16[2,128,128], index: 2, kind: input, shape index: {}]   ;;  %s2113_s3 = inlined_call_operand.vmem [shape: f32[2,1,128], index: 3, kind: input, shape index: {}]   ;;  %s2114_s4 = inlined_call_operand.hbm [shape: bf16[2,128,128], index: 4, kind: input, shape index: {}]   ;;  %s2115_s5 = inlined_call_operand.vmem [shape: f32[2,1,128], index: 5, kind: input, shape index: {}]   ;;  %s2116_s6 = inlined_call_operand.vmem [shape: f32[2,1,128], index: 6, kind: input, shape index: {}]   ;;  %s2117_s7 = inlined_call_operand.hbm [shape: f32[128,128], index: 7, kind: output, shape index: {}]  }
   0x1   :  { %2126 = sst [smem:[#allocation15_spill]] %s2110_s0 }
   0x2   :  { %12 = vsyncpa [#allocation4], 0 }
   0x3   :  { %13 = vsyncpa [#allocation7], 0 }
   0x4   :  { %14 = vsyncpa [#allocation5], 0  ;;  %s1723_s24 = smov 0   ;;  %s1725_s25 = smov 0  }
   0x5   :  { %s1727_s26 = smov 0   ;;  %s1729_s27 = smov 0  }
   0x6 LB: > { %s1742_s28 = sadd.s32 4294967295, %s1670_s27   ;;  %s1745_s29 = sadd.s32 1, %s1670_s27   ;;  %s1670_s27 = sphi %s1729_s27, %s2150_s27   ;;  %s1666_s26 = sphi %s1727_s26, %s2149_s26   ;;  %s1662_s25 = sphi %s1725_s25, %s2148_s25   ;;  %s1658_s24 = sphi %s1723_s24, %s2147_s24  }
   0x7   : > { %s66_s30 = ssub.s32 %s1670_s27, %s1745_s29  ;;  %s69_s8 = sadd.s32 1, %s1666_s26 }
   0x8   : > { %p67_p0 = scmp.eq.s32.totalorder %s66_s30, 0  ;;  %p76_p1 = scmp.ne.s32.totalorder %s1666_s26, %s1662_s25 }
   0x9   : > { %p77_p2 = scmp.eq.s32.totalorder %s1670_s27, 0  ;;  %p82_p3 = scmp.ne.s32.totalorder %s1662_s25, %s1658_s24 }
   0xa   : > { %s1755_s9 = scalar_select %p67_p0, %s1666_s26, %s69_s8  }
   0xb   : > { %p1757_p4 = por %p77_p2, %p76_p1  ;;  %p2118_p5 = scmp.eq.s32.totalorder %s1742_s28, 0 }
   0xc   : > { %p1208_p6 = scmp.ge.s32.totalorder %s1670_s27, 1  ;;  %p218_p7 = scmp.lt.s32.totalorder %s1670_s27, 3 }
   0xd   : > { %p1766_p8 = por %p2118_p5, %p82_p3  ;;  %s1672_s13 = smov [#allocation3]  }
   0xe   : > { %p1771_p10 = pnand %p1208_p6, %p218_p7  ;;  %s230_s14 = sshll.u32 %s1672_s13, 4  ;;  %s231_s14 = int_to_ptr.vmem [resolvable:$true] %s230_s14 }
   0xf   : > { %s2128_s11 = scalar_select %p1766_p8, 1, 0 }
  0x10   : > { %s2129_s12 = scalar_select %p1771_p10, 1, 0 }
  0x11   : > { %p1402_p11 = pneg %p1771_p10  ;;  %p1418_p13 = scmp.lt.s32.totalorder %s1670_s27, 2 }
  0x12   : > { %s2132_s0 = sld [smem:[#allocation15_spill]] }
  0x13   : > { %p1779_p12 = pnand %p1402_p11, %p2118_p5  ;;  %p1786_p0 = pnand %p1418_p13, %p1757_p4 }
  0x15   : > { %s2131_s16 = scalar_select %p1786_p0, 1, 0 }
  0x16   : > { %p2123_p2 = pneg %p1779_p12 }
  0x18   : > { %s1482_s19 = scalar_lea.hbm %s2132_s0, 2048 }
  0x19   : > { %p1483_p1 = scmp.ne.s32.totalorder %s2132_s0, %s1482_s19  ;;  %p1489_p4 = scmp.lt.u32.totalorder %s1482_s19, %s2132_s0 }
  0x1b   : > { %p1485_p3 = pnand %p2123_p2, %p1483_p1 }
  0x1d   : > { %p1486_p6 = pneg %p1485_p3 }
  0x1f   : > { %p1491_p7 = pnand %p1489_p4, %p1486_p6 }
  0x21   : > { %1494 = shalt.err (!%p1491_p7)
}
  0x22   : > { %s1495_s24 = scalar_lea.vmem %s231_s14, 2048  ;;  %p1503_p5 = scmp.lt.s32.totalorder %s231_s14, %s231_s14 }
  0x23   : > { %p1496_p11 = scmp.ne.s32.totalorder %s231_s14, %s1495_s24  ;;  %p1504_p8 = scmp.lt.s32.totalorder %s1495_s24, %s1495_s24 }
  0x25   : > { %p1498_p13 = pnand %p1496_p11, %p2123_p2  ;;  %p1505_p10 = por %p1504_p8, %p1503_p5 }
  0x27   : > { %p1499_p9 = pneg %p1498_p13 }
  0x29   : > { %p1506_p0 = pnand %p1505_p10, %p1499_p9 }
  0x2b   : > { %1509 = shalt.err (!%p1506_p0)
}
  0x2c   : > { %s1673_s30 = smov 128   ;;  %s1674_s8 = smov 8  }
  0x2d   : > { %1405 = dma.hbm_to_vmem [thread:$0]  (!%p1779_p12), %s2132_s0, 2048, %s231_s14, [#allocation4], %s1673_s30, %s1673_s30, %s1674_s8  }
  0x2e   : > { %s257_s17 = sand.u32 1, %s1670_s27   ;;  %s259_s18 = sand.u32 1, %s1666_s26  }
  0x2f   : > { %s1814_s19 = sshll.u32 %s259_s18, 6  ;;  %s2122_s20 = sshll.u32 %s1670_s27, 10 }
  0x30   : > { %s1822_s23 = scalar_lea.hbm %s2112_s2, %s2122_s20  ;;  %s261_s24 = scalar_lea.vmem [#allocation8], %s1814_s19 }
  0x31   : > { %s268_s10 = sshll.u32 %s261_s24, 4  ;;  %s1675_s14 = smov [#allocation6]   ;;  %s1825_s10 = int_to_ptr.vmem [resolvable:$true] %s268_s10 }
  0x32   : > { %s1827_s30 = sshll.u32 %s1675_s14, 4  ;;  %s1829_s8 = scalar_lea.sflag [#allocation4], %s257_s17  ;;  %s244_s30 = int_to_ptr.vmem [resolvable:$true] %s1827_s30 }
  0x33   : > { %s1510_s13 = scalar_lea.hbm %s1822_s23, 1024  ;;  %p2133_p8 = scmp.ne.s32.totalorder %s2131_s16, 0 }
  0x34   : > { %p1511_p5 = scmp.ne.s32.totalorder %s1822_s23, %s1510_s13  ;;  %s1515_s22 = scalar_lea.hbm %s2112_s2, 2048 }
  0x35   : > { %p2124_p9 = pneg %p2133_p8  ;;  %p1516_p1 = scmp.lt.u32.totalorder %s1822_s23, %s2112_s2 }
  0x36   : > { %p1517_p3 = scmp.lt.u32.totalorder %s1515_s22, %s1510_s13  ;;  %p1519_p4 = scmp.lt.u32.totalorder %s1510_s13, %s1822_s23 }
  0x37   : > { %p1513_p10 = pnand %p2124_p9, %p1511_p5 }
  0x38   : > { %p1518_p6 = por %p1517_p3, %p1516_p1 }
  0x39   : > { %p1514_p0 = pneg %p1513_p10 }
  0x3a   : > { %p1520_p7 = por %p1519_p4, %p1518_p6 }
  0x3c   : > { %p1521_p11 = pnand %p1520_p7, %p1514_p0 }
  0x3e   : > { %1524 = shalt.err (!%p1521_p11)
}
  0x3f   : > { %s1525_s17 = scalar_lea.vmem %s1825_s10, 1024  ;;  %s1676_s14 = smov [#allocation8]  }
  0x40   : > { %p1526_p13 = scmp.ne.s32.totalorder %s1825_s10, %s1525_s17  ;;  %s1530_s18 = sshll.u32 %s1676_s14, 4  ;;  %s1531_s18 = int_to_ptr.vmem [resolvable:$false] %s1530_s18 }
  0x41   : > { %s1532_s20 = scalar_lea.vmem %s1531_s18, 2048  ;;  %p1533_p2 = scmp.lt.s32.totalorder %s1825_s10, %s1531_s18 }
  0x42   : > { %p1528_p5 = pnand %p1526_p13, %p2124_p9  ;;  %p1534_p1 = scmp.lt.s32.totalorder %s1532_s20, %s1525_s17 }
  0x44   : > { %p1529_p10 = pneg %p1528_p5  ;;  %p1535_p3 = por %p1534_p1, %p1533_p2 }
  0x46   : > { %p1536_p6 = pnand %p1535_p3, %p1529_p10 }
  0x48   : > { %1539 = shalt.err (!%p1536_p6)
}
  0x49   : > { %s1677_s13 = smov 64   ;;  %s1678_s21 = smov 4  }
  0x4a   : > { %1412 = dma.hbm_to_vmem [thread:$0]  (!%p2133_p8), %s1822_s23, 1024, %s1825_s10, %s1829_s8, %s1677_s13, %s1677_s13, %s1678_s21  }
  0x4b   : > { %s1540_s17 = scalar_lea.hbm %s2111_s1, 1024  ;;  %p2134_p0 = pneg %p1779_p12 }
  0x4c   : > { %p1541_p2 = scmp.ne.s32.totalorder %s2111_s1, %s1540_s17  ;;  %p1547_p11 = scmp.lt.u32.totalorder %s1540_s17, %s2111_s1 }
  0x4e   : > { %p1543_p4 = pnand %p1541_p2, %p2134_p0 }
  0x50   : > { %p1544_p7 = pneg %p1543_p4 }
  0x52   : > { %p1549_p13 = pnand %p1547_p11, %p1544_p7 }
  0x54   : > { %1552 = shalt.err (!%p1549_p13)
}
  0x55   : > { %s1553_s23 = scalar_lea.vmem %s244_s30, 1024  ;;  %p2135_p10 = pmov %p2134_p0 }
  0x56   : > { %p1554_p5 = scmp.ne.s32.totalorder %s244_s30, %s1553_s23  ;;  %p1561_p6 = scmp.lt.s32.totalorder %s244_s30, %s244_s30 }
  0x57   : > { %p1562_p9 = scmp.lt.s32.totalorder %s1553_s23, %s1553_s23 }
  0x58   : > { %p1556_p1 = pnand %p1554_p5, %p2135_p10 }
  0x59   : > { %p1563_p8 = por %p1562_p9, %p1561_p6 }
  0x5a   : > { %p1557_p3 = pneg %p1556_p1 }
  0x5c   : > { %p1564_p0 = pnand %p1563_p8, %p1557_p3 }
  0x5e   : > { %1567 = shalt.err (!%p1564_p0)
}
  0x5f   : > { %1408 = dma.hbm_to_vmem [thread:$0]  (!%p1779_p12), %s2111_s1, 1024, %s244_s30, [#allocation7], %s1677_s13, %s1677_s13, %s1678_s21  }
  0x60   : > { %s2136_s22 = sshll.u32 %s1670_s27, 10  ;;  %s288_s15 = scalar_lea.vmem [#allocation9], %s1814_s19 }
  0x61   : > { %s1889_s14 = scalar_lea.hbm %s2114_s4, %s2136_s22  ;;  %s295_s18 = sshll.u32 %s288_s15, 4  ;;  %s1892_s18 = int_to_ptr.vmem [resolvable:$true] %s295_s18 }
  0x62   : > { %s1568_s20 = scalar_lea.hbm %s1889_s14, 1024  ;;  %p2137_p9 = scmp.ne.s32.totalorder %s2131_s16, 0 }
  0x63   : > { %p1569_p8 = scmp.ne.s32.totalorder %s1889_s14, %s1568_s20  ;;  %s1573_s23 = scalar_lea.hbm %s2114_s4, 2048 }
  0x64   : > { %p2138_p2 = pneg %p2137_p9  ;;  %p1574_p7 = scmp.lt.u32.totalorder %s1889_s14, %s2114_s4 }
  0x65   : > { %p1575_p11 = scmp.lt.u32.totalorder %s1573_s23, %s1568_s20  ;;  %p1577_p5 = scmp.lt.u32.totalorder %s1568_s20, %s1889_s14 }
  0x66   : > { %p1571_p4 = pnand %p1569_p8, %p2138_p2 }
  0x67   : > { %p1576_p13 = por %p1575_p11, %p1574_p7 }
  0x68   : > { %p1572_p12 = pneg %p1571_p4 }
  0x69   : > { %p1578_p10 = por %p1577_p5, %p1576_p13 }
  0x6b   : > { %p1579_p1 = pnand %p1578_p10, %p1572_p12 }
  0x6d   : > { %1582 = shalt.err (!%p1579_p1)
}
  0x6e   : > { %s1583_s19 = scalar_lea.vmem %s1892_s18, 1024  ;;  %p2139_p6 = pmov %p2138_p2 }
  0x6f   : > { %p1584_p3 = scmp.ne.s32.totalorder %s1892_s18, %s1583_s19  ;;  %s1679_s22 = smov [#allocation9]  }
  0x70   : > { %s1588_s24 = sshll.u32 %s1679_s22, 4  ;;  %s1589_s24 = int_to_ptr.vmem [resolvable:$false] %s1588_s24 }
  0x71   : > { %p1586_p0 = pnand %p1584_p3, %p2139_p6  ;;  %s1590_s17 = scalar_lea.vmem %s1589_s24, 2048 }
  0x72   : > { %p1591_p2 = scmp.lt.s32.totalorder %s1892_s18, %s1589_s24  ;;  %p1592_p4 = scmp.lt.s32.totalorder %s1590_s17, %s1583_s19 }
  0x73   : > { %p1587_p8 = pneg %p1586_p0 }
  0x74   : > { %p1593_p7 = por %p1592_p4, %p1591_p2 }
  0x76   : > { %p1594_p11 = pnand %p1593_p7, %p1587_p8 }
  0x78   : > { %1597 = shalt.err (!%p1594_p11)
}
  0x79   : > { %1415 = dma.hbm_to_vmem [thread:$0]  (!%p2137_p9), %s1889_s14, 1024, %s1892_s18, %s1829_s8, %s1677_s13, %s1677_s13, %s1678_s21  }
  0x7a   : > { %p2140_p12 = scmp.ne.s32.totalorder %s2129_s12, 0 }
  0x7b   : > { %p2141_p13 = scmp.eq.s32.totalorder (!%p2140_p12), %s1742_s28, 0 }
  0x7c   : > { %319 = sbr.rel (%p2140_p12) target bundleno = 818 (0x332), region = 48 }
  0x83   : > { %1641 = dma.done.wait (%p2141_p13), [#allocation4], 2048   ;;  %p2142_p5 = pmov %p2141_p13 }
  0x85   : > { %1643 = vsyncadd (%p2142_p5), [#allocation4], 4294965248  ;;  %p2143_p10 = pmov %p2142_p5 }
  0x86   : > { %p2144_p1 = pmov %p2142_p5 }
  0x87   : > { %1645 = dma.done.wait (%p2143_p10), [#allocation7], 1024  }
  0x88   : > { %1647 = vsyncadd (%p2144_p1), [#allocation7], 4294966272  ;;  %s329_s16 = sand.u32 1, %s1742_s28   ;;  %s331_s8 = sand.u32 1, %s1662_s25  }
  0x89   : > { %s1221_s13 = sshll.u32 %s331_s8, 6  ;;  %s330_s12 = scalar_lea.sflag [#allocation4], %s329_s16 }
  0x8a   : > { %s1933_s21 = scalar_lea.vmem [#allocation8], %s1221_s13  ;;  %p2145_p9 = scmp.ne.s32.totalorder %s2128_s11, 0 }
  0x8c   : > { %1649 = dma.done.wait (%p2145_p9), %s330_s12, 2048  }
  0x8d   : > { %1651 = vsyncadd (%p2145_p9), %s330_s12, 4294965248  ;;  %p382_p3 = scmp.lt.s32.totalorder %s1742_s28, 1  ;;  %s1955_s19 = scalar_lea.vmem [#allocation9], %s1221_s13 }
  0x8e   : > { %p2146_p6 = scmp.ne.s32.totalorder %s1742_s28, 0 }
  0x8f   : > { %s1941_s14 = scalar_select %p382_p3, %s1742_s28, 1 }
  0x90   : > { %395 = sbr.rel (%p2146_p6) target bundleno = 153 (0x99), region = 68  ;;  %v396_v0 = vld [vmem:[#allocation3] sm:$0xff] (!%p2146_p6)  ;;  %v397_v1 = vld [vmem:[#allocation3 + $0x8] sm:$0xff] (!%p2146_p6)  ;;  %v398_v2 = vld [vmem:[#allocation3 + $0x10] sm:$0xff] (!%p2146_p6) }
  0x91   : > { %s384_s20 = scalar_lea.vmem %s2113_s3, %s1941_s14  ;;  %s387_s23 = scalar_lea.vmem %s2115_s5, %s1941_s14  ;;  %v412_v3 = vpack.c.bf16 (!%p2146_p6), %v397_v1, %v396_v0  ;;  %v399_v4 = vld [vmem:[#allocation3 + $0x18] sm:$0xff] (!%p2146_p6)  ;;  %v400_v5 = vld [vmem:[#allocation3 + $0x20] sm:$0xff] (!%p2146_p6)  ;;  %v401_v6 = vld [vmem:[#allocation3 + $0x28] sm:$0xff] (!%p2146_p6) }
  0x92   : > { %s390_s11 = scalar_lea.vmem %s2116_s6, %s1941_s14  ;;  %v413_v7 = vpack.c.bf16 (!%p2146_p6), %v399_v4, %v398_v2  ;;  %v414_v8 = vpack.c.bf16 (!%p2146_p6), %v401_v6, %v400_v5  ;;  %v402_v9 = vld [vmem:[#allocation3 + $0x30] sm:$0xff] (!%p2146_p6)  ;;  %v403_v10 = vld [vmem:[#allocation3 + $0x38] sm:$0xff] (!%p2146_p6)  ;;  %v404_v11 = vld [vmem:[#allocation3 + $0x40] sm:$0xff] (!%p2146_p6) }
  0x93   : > { %420 = vst [vmem:[#allocation2] sm:$0xff] (!%p2146_p6), %v412_v3  ;;  %v415_v12 = vpack.c.bf16 (!%p2146_p6), %v403_v10, %v402_v9  ;;  %v405_v13 = vld [vmem:[#allocation3 + $0x48] sm:$0xff] (!%p2146_p6)  ;;  %v406_v14 = vld [vmem:[#allocation3 + $0x50] sm:$0xff] (!%p2146_p6)  ;;  %v407_v15 = vld [vmem:[#allocation3 + $0x58] sm:$0xff] (!%p2146_p6) }
  0x94   : > { %421 = vst [vmem:[#allocation2 + $0x8] sm:$0xff] (!%p2146_p6), %v413_v7  ;;  %422 = vst [vmem:[#allocation2 + $0x10] sm:$0xff] (!%p2146_p6), %v414_v8  ;;  %v416_v16 = vpack.c.bf16 (!%p2146_p6), %v405_v13, %v404_v11  ;;  %v417_v17 = vpack.c.bf16 (!%p2146_p6), %v407_v15, %v406_v14  ;;  %v408_v18 = vld [vmem:[#allocation3 + $0x60] sm:$0xff] (!%p2146_p6)  ;;  %v409_v19 = vld [vmem:[#allocation3 + $0x68] sm:$0xff] (!%p2146_p6) }
  0x95   : > { %v410_v20 = vld [vmem:[#allocation3 + $0x70] sm:$0xff] (!%p2146_p6)  ;;  %423 = vst [vmem:[#allocation2 + $0x18] sm:$0xff] (!%p2146_p6), %v415_v12  ;;  %v418_v21 = vpack.c.bf16 (!%p2146_p6), %v409_v19, %v408_v18  ;;  %v411_v22 = vld [vmem:[#allocation3 + $0x78] sm:$0xff] (!%p2146_p6) }
  0x96   : > { %424 = vst [vmem:[#allocation2 + $0x20] sm:$0xff] (!%p2146_p6), %v416_v16  ;;  %425 = vst [vmem:[#allocation2 + $0x28] sm:$0xff] (!%p2146_p6), %v417_v17  ;;  %v419_v23 = vpack.c.bf16 (!%p2146_p6), %v411_v22, %v410_v20 }
  0x97   : > { %426 = vst [vmem:[#allocation2 + $0x30] sm:$0xff] %v418_v21 }
  0x98   : > { %427 = vst [vmem:[#allocation2 + $0x38] sm:$0xff] %v419_v23 }
  0x99 PF: > { %v1464_v24 = vld [vmem:[%s1933_s21] sm:$0xff]   ;;  %v1465_v25 = vld [vmem:[%s1933_s21 + $0x8] sm:$0xff]   ;;  %v1466_v26 = vld [vmem:[%s1933_s21 + $0x10] sm:$0xff]   ;;  %p1243_p0 = scmp.ge.s32.totalorder %s1742_s28, 1 }
  0x9a   : > { %1322 = vmatprep.subr.bf16.mxu0 %v1464_v24  ;;  %v1467_v27 = vld [vmem:[%s1933_s21 + $0x18] sm:$0xff]   ;;  %v1468_v29 = vld [vmem:[%s1933_s21 + $0x20] sm:$0xff]   ;;  %v1469_v30 = vld [vmem:[%s1933_s21 + $0x28] sm:$0xff]  }
  0x9b   : > { %1323 = vmatpush3.bf16.msra.mxu0 %v1464_v24  ;;  %v1470_v31 = vld [vmem:[%s1933_s21 + $0x30] sm:$0xff]   ;;  %v1471_v32 = vld [vmem:[%s1933_s21 + $0x38] sm:$0xff]   ;;  %v1472_v40 = vld [vmem:[#allocation6] sm:$0xff]  }
  0x9c   : > { %1324 = vmatprep.subr.bf16.mxu0 %v1465_v25  ;;  %v493_v28 = vld [vmem:[#allocation2] sm:$0xff]  ;;  %1370 = vmatprep.mubr.bf16.mxu1 %v1472_v40  ;;  %v1473_v18 = vld [vmem:[#allocation6 + $0x8] sm:$0xff]   ;;  %v1474_v19 = vld [vmem:[#allocation6 + $0x10] sm:$0xff]  }
  0x9d   : > { %1338 = vmatprep.mubr.bf16.mxu0 %v493_v28  ;;  %v494_v33 = vld [vmem:[#allocation2 + $0x8] sm:$0xff]  ;;  %v495_v34 = vld [vmem:[#allocation2 + $0x10] sm:$0xff]  ;;  %v1224_v42 = vld [vmem:[%s384_s20] ss:$0 sm:$0xff] }
  0x9e   : > { %v496_v35 = vld [vmem:[#allocation2 + $0x18] sm:$0xff]  ;;  %v1476_v21 = vld [vmem:[#allocation6 + $0x20] sm:$0xff]   ;;  %v1477_v22 = vld [vmem:[#allocation6 + $0x28] sm:$0xff]  }
  0x9f   : > { %1325 = vmatpush3.bf16.msra.mxu0 %v1465_v25  ;;  %v497_v36 = vld [vmem:[#allocation2 + $0x20] sm:$0xff]  ;;  %v498_v37 = vld [vmem:[#allocation2 + $0x28] sm:$0xff]  ;;  %v500_v39 = vld [vmem:[#allocation2 + $0x38] sm:$0xff] }
  0xa0   : > { %1326 = vmatprep.subr.bf16.mxu0 %v1466_v26  ;;  %v499_v38 = vld [vmem:[#allocation2 + $0x30] sm:$0xff]  ;;  %v1475_v20 = vld [vmem:[#allocation6 + $0x18] sm:$0xff]   ;;  %v1252_v25 = vld [vmem:[%s1955_s19] sm:$0xff]  }
  0xa1   : > { %v1478_v23 = vld [vmem:[#allocation6 + $0x30] sm:$0xff]   ;;  %v1479_v24 = vld [vmem:[#allocation6 + $0x38] sm:$0xff]   ;;  %v1253_v28 = vunpack.c.l.bf16 %v1252_v25 }
  0xa3   : > { %1327 = vmatpush3.bf16.msra.mxu0 %v1466_v26  ;;  %v1283_v26 = vld [vmem:[%s1955_s19 + $0x8] sm:$0xff]  }
  0xa4   : > { %1328 = vmatprep.subr.bf16.mxu0 %v1467_v27 }
  0xa7   : > { %1329 = vmatpush3.bf16.msra.mxu0 %v1467_v27 }
  0xa8   : > { %1330 = vmatprep.subr.bf16.mxu0 %v1468_v29 }
  0xab   : > { %1331 = vmatpush3.bf16.msra.mxu0 %v1468_v29  ;;  %v1254_v29 = vunpack.c.h.bf16 %v1252_v25 }
  0xac   : > { %1332 = vmatprep.subr.bf16.mxu0 %v1469_v30 }
  0xaf   : > { %1333 = vmatpush3.bf16.msra.mxu0 %v1469_v30 }
  0xb0   : > { %1334 = vmatprep.subr.bf16.mxu0 %v1470_v31 }
  0xb3   : > { %1335 = vmatpush3.bf16.msra.mxu0 %v1470_v31  ;;  %v1257_v31 = vunpack.c.l.bf16 %v1283_v26 }
  0xb4   : > { %1336 = vmatprep.subr.bf16.mxu0 %v1471_v32 }
  0xb7   : > { %1337 = vmatpush3.bf16.msra.mxu0 %v1471_v32 }
  0xba   : > { %1339 = vmatmul.mubr.bf16.vlgmr.msra.gmra.mrb[0].mxu0 %v494_v33 }
  0xbb   : > { %1342 = vmatprep.mubr.bf16.mxu0 %v495_v34  ;;  %v1284_v34 = vld [vmem:[%s1955_s19 + $0x10] sm:$0xff]  }
  0xbc   : > { %v1261_v40 = vunpack.c.l.bf16 %v1284_v34 }
  0xc2   : > { %1343 = vmatmul.mubr.bf16.gmra.mrb[4].mxu0 %v496_v35 }
  0xc3   : > { %1346 = vmatprep.mubr.bf16.mxu0 %v497_v36  ;;  %v1258_v36 = vunpack.c.h.bf16 %v1283_v26 }
  0xca   : > { %1347 = vmatmul.mubr.bf16.gmra.mrb[8].mxu0 %v498_v37 }
  0xcb   : > { %1350 = vmatprep.mubr.bf16.mxu0 %v499_v38 }
  0xd2   : > { %1351 = vmatmul.mubr.bf16.gmra.mrb[12].mxu0 %v500_v39 }
 0x18d   : > { %v1340_v41 = vpop.f32.mrb[0].mxu0 }
 0x18e   : > { %v606_v43 = vpop.f32.mrb[1].mxu0  ;;  %v615_v45 = vadd.f32 %v1340_v41, %v1224_v42  ;;  %v1285_v41 = vld [vmem:[%s1955_s19 + $0x18] sm:$0xff]  }
 0x18f   : > { %v1341_v44 = vpop.f32.mrb[2].mxu0  ;;  %v607_v48 = vadd.f32 %v1224_v42, %v606_v43 }
 0x190   : > { %v618_v46 = vadd.f32 %v1341_v44, %v1224_v42  ;;  %v609_v47 = vpop.f32.mrb[3].mxu0 }
 0x191   : > { %v610_v49 = vadd.f32 %v1224_v42, %v609_v47  ;;  %v1265_v47 = vunpack.c.l.bf16 %v1285_v41 }
 0x192   : > { %v686_v50 = vpack.c.bf16 %v618_v46, %v615_v45  ;;  %v1262_v45 = vunpack.c.h.bf16 %v1284_v34 }
 0x193   : > { %v685_v51 = vpack.c.bf16 %v610_v49, %v607_v48 }
 0x195   : > { %v1344_v52 = vpop.f32.mrb[4].mxu0  ;;  %1354 = vmatprep.subr.bf16.mxu1 %v685_v51 }
 0x196   : > { %v622_v53 = vpop.f32.mrb[5].mxu0  ;;  %1355 = vmatpush3.bf16.msra.mxu1 %v685_v51  ;;  %v631_v55 = vadd.f32 %v1344_v52, %v1224_v42  ;;  %v1286_v52 = vld [vmem:[%s1955_s19 + $0x20] sm:$0xff]  }
 0x197   : > { %v1345_v54 = vpop.f32.mrb[6].mxu0  ;;  %1356 = vmatprep.subr.bf16.mxu1 %v686_v50  ;;  %v623_v58 = vadd.f32 %v1224_v42, %v622_v53 }
 0x198   : > { %v634_v56 = vadd.f32 %v1345_v54, %v1224_v42  ;;  %v625_v57 = vpop.f32.mrb[7].mxu0  ;;  %v1266_v54 = vunpack.c.h.bf16 %v1285_v41 }
 0x199   : > { %v626_v59 = vadd.f32 %v1224_v42, %v625_v57 }
 0x19a   : > { %v688_v60 = vpack.c.bf16 %v634_v56, %v631_v55  ;;  %1357 = vmatpush3.bf16.msra.mxu1 %v686_v50 }
 0x19b   : > { %v687_v61 = vpack.c.bf16 %v626_v59, %v623_v58  ;;  %v1269_v58 = vunpack.c.l.bf16 %v1286_v52  ;;  %v1287_v59 = vld [vmem:[%s1955_s19 + $0x28] sm:$0xff]  }
 0x19d   : > { %v1348_v62 = vpop.f32.mrb[8].mxu0  ;;  %1358 = vmatprep.subr.bf16.mxu1 %v687_v61 }
 0x19e   : > { %v638_v63 = vpop.f32.mrb[9].mxu0  ;;  %1359 = vmatpush3.bf16.msra.mxu1 %v687_v61  ;;  %v647_v1 = vadd.f32 %v1348_v62, %v1224_v42 }
 0x19f   : > { %v1349_v0 = vpop.f32.mrb[10].mxu0  ;;  %1360 = vmatprep.subr.bf16.mxu1 %v688_v60  ;;  %v639_v4 = vadd.f32 %v1224_v42, %v638_v63  ;;  %v1270_v63 = vunpack.c.h.bf16 %v1286_v52 }
 0x1a0   : > { %v650_v2 = vadd.f32 %v1349_v0, %v1224_v42  ;;  %v641_v3 = vpop.f32.mrb[11].mxu0 }
 0x1a1   : > { %v642_v5 = vadd.f32 %v1224_v42, %v641_v3 }
 0x1a2   : > { %v690_v6 = vpack.c.bf16 %v650_v2, %v647_v1  ;;  %1361 = vmatpush3.bf16.msra.mxu1 %v688_v60  ;;  %v1273_v1 = vunpack.c.l.bf16 %v1287_v59 }
 0x1a3   : > { %v689_v7 = vpack.c.bf16 %v642_v5, %v639_v4 }
 0x1a5   : > { %v1352_v8 = vpop.f32.mrb[12].mxu0  ;;  %1362 = vmatprep.subr.bf16.mxu1 %v689_v7 }
 0x1a6   : > { %v654_v9 = vpop.f32.mrb[13].mxu0  ;;  %1363 = vmatpush3.bf16.msra.mxu1 %v689_v7  ;;  %v663_v11 = vadd.f32 %v1352_v8, %v1224_v42  ;;  %v1274_v8 = vunpack.c.h.bf16 %v1287_v59 }
 0x1a7   : > { %v1353_v10 = vpop.f32.mrb[14].mxu0  ;;  %1364 = vmatprep.subr.bf16.mxu1 %v690_v6  ;;  %v655_v14 = vadd.f32 %v1224_v42, %v654_v9 }
 0x1a8   : > { %v666_v12 = vadd.f32 %v1353_v10, %v1224_v42  ;;  %v657_v13 = vpop.f32.mrb[15].mxu0 }
 0x1a9   : > { %v658_v15 = vadd.f32 %v1224_v42, %v657_v13  ;;  %v1289_v13 = vld [vmem:[%s1955_s19 + $0x38] sm:$0xff]  }
 0x1aa   : > { %v692_v16 = vpack.c.bf16 %v666_v12, %v663_v11  ;;  %1365 = vmatpush3.bf16.msra.mxu1 %v690_v6  ;;  %v1288_v6 = vld [vmem:[%s1955_s19 + $0x30] sm:$0xff]   ;;  %v1282_v25 = vunpack.c.h.bf16 %v1289_v13 }
 0x1ab   : > { %v691_v17 = vpack.c.bf16 %v658_v15, %v655_v14  ;;  %v1277_v12 = vunpack.c.l.bf16 %v1288_v6 }
 0x1ad   : > { %1366 = vmatprep.subr.bf16.mxu1 %v691_v17 }
 0x1ae   : > { %1367 = vmatpush3.bf16.msra.mxu1 %v691_v17  ;;  %v1278_v17 = vunpack.c.h.bf16 %v1288_v6 }
 0x1af   : > { %1368 = vmatprep.subr.bf16.mxu1 %v692_v16 }
 0x1b2   : > { %1369 = vmatpush3.bf16.msra.mxu1 %v692_v16 }
 0x1b5   : > { %1371 = vmatmul.mubr.bf16.vlgmr.msra.gmra.mrb[0].mxu1 %v1473_v18 }
 0x1b6   : > { %1374 = vmatprep.mubr.bf16.mxu1 %v1474_v19  ;;  %v1281_v19 = vunpack.c.l.bf16 %v1289_v13 }
 0x1bd   : > { %1375 = vmatmul.mubr.bf16.gmra.mrb[4].mxu1 %v1475_v20 }
 0x1be   : > { %1378 = vmatprep.mubr.bf16.mxu1 %v1476_v21 }
 0x1c5   : > { %1379 = vmatmul.mubr.bf16.gmra.mrb[8].mxu1 %v1477_v22 }
 0x1c6   : > { %1382 = vmatprep.mubr.bf16.mxu1 %v1478_v23 }
 0x1cd   : > { %1383 = vmatmul.mubr.bf16.gmra.mrb[12].mxu1 %v1479_v24 }
 0x288   : > { %v1372_v27 = vpop.f32.mrb[0].mxu1 }
 0x289   : > { %v807_v30 = vpop.f32.mrb[1].mxu1  ;;  %v1979_v38 = vadd.f32 %v1372_v27, %v1257_v31 }
 0x28a   : > { %v1373_v32 = vpop.f32.mrb[2].mxu1  ;;  %v1975_v35 = vadd.f32 %v1253_v28, %v807_v30 }
 0x28b   : > { %v810_v33 = vpop.f32.mrb[3].mxu1  ;;  %v1984_v42 = vadd.f32 %v1373_v32, %v1258_v36 }
 0x28c   : > { %v1977_v37 = vadd.f32 %v1254_v29, %v810_v33 }
 0x28e   : > { %v870_v39 = vadd.f32 %v1977_v37, %v1975_v35 }
 0x290   : > { %v871_v43 = vadd.f32 %v870_v39, %v1979_v38  ;;  %v1376_v44 = vpop.f32.mrb[4].mxu1 }
 0x291   : > { %v823_v46 = vpop.f32.mrb[5].mxu1  ;;  %v832_v56 = vadd.f32 %v1376_v44, %v1265_v47 }
 0x292   : > { %v824_v48 = vadd.f32 %v1261_v40, %v823_v46  ;;  %v872_v49 = vadd.f32 %v871_v43, %v1984_v42  ;;  %v1377_v50 = vpop.f32.mrb[6].mxu1 }
 0x293   : > { %v826_v51 = vpop.f32.mrb[7].mxu1  ;;  %v835_v60 = vadd.f32 %v1377_v50, %v1266_v54 }
 0x294   : > { %v873_v53 = vadd.f32 %v872_v49, %v824_v48  ;;  %v827_v55 = vadd.f32 %v1262_v45, %v826_v51 }
 0x296   : > { %v874_v57 = vadd.f32 %v873_v53, %v827_v55 }
 0x298   : > { %v875_v61 = vadd.f32 %v874_v57, %v832_v56  ;;  %v1380_v62 = vpop.f32.mrb[8].mxu1 }
 0x299   : > { %v839_v0 = vpop.f32.mrb[9].mxu1  ;;  %v848_v10 = vadd.f32 %v1380_v62, %v1273_v1 }
 0x29a   : > { %v840_v2 = vadd.f32 %v1269_v58, %v839_v0  ;;  %v876_v3 = vadd.f32 %v875_v61, %v835_v60  ;;  %v1381_v4 = vpop.f32.mrb[10].mxu1 }
 0x29b   : > { %v842_v5 = vpop.f32.mrb[11].mxu1  ;;  %v851_v14 = vadd.f32 %v1381_v4, %v1274_v8 }
 0x29c   : > { %v877_v7 = vadd.f32 %v876_v3, %v840_v2  ;;  %v843_v9 = vadd.f32 %v1270_v63, %v842_v5 }
 0x29e   : > { %v878_v11 = vadd.f32 %v877_v7, %v843_v9 }
 0x2a0   : > { %v879_v15 = vadd.f32 %v878_v11, %v848_v10  ;;  %v1384_v16 = vpop.f32.mrb[12].mxu1 }
 0x2a1   : > { %v855_v18 = vpop.f32.mrb[13].mxu1  ;;  %v864_v27 = vadd.f32 %v1384_v16, %v1281_v19 }
 0x2a2   : > { %v856_v20 = vadd.f32 %v1277_v12, %v855_v18  ;;  %v880_v21 = vadd.f32 %v879_v15, %v851_v14  ;;  %v1385_v22 = vpop.f32.mrb[14].mxu1 }
 0x2a3   : > { %v858_v23 = vpop.f32.mrb[15].mxu1  ;;  %v867_v29 = vadd.f32 %v1385_v22, %v1282_v25 }
 0x2a4   : > { %v881_v24 = vadd.f32 %v880_v21, %v856_v20  ;;  %v859_v26 = vadd.f32 %v1278_v17, %v858_v23 }
 0x2a6   : > { %v882_v28 = vadd.f32 %v881_v24, %v859_v26 }
 0x2a8   : > { %v883_v30 = vadd.f32 %v882_v28, %v864_v27 }
 0x2aa   : > { %v884_v31 = vadd.f32 %v883_v30, %v867_v29 }
 0x2ac   : > { %v885_v32 = vrot.slane %v884_v31, 4 }
 0x2ae   : > { %v886_v33 = vadd.f32 %v885_v32, %v884_v31 }
 0x2b0   : > { %v887_v34 = vrot.slane %v886_v33, 2 }
 0x2b2   : > { %v888_v36 = vadd.f32 %v887_v34, %v886_v33 }
 0x2b4   : > { %v889_v39 = vrot.slane %v888_v36, 1 }
 0x2b6   : > { %v890_v40 = vadd.f32 %v889_v39, %v888_v36 }
 0x2b8   : > { %v891_v41 = vmul.f32 0.0625, %v890_v40 }
 0x2ba   : > { %v1993_v43 = vsub.f32 %v1975_v35, %v891_v41  ;;  %v1996_v44 = vsub.f32 %v1977_v37, %v891_v41  ;;  %v1999_v45 = vsub.f32 %v1979_v38, %v891_v41  ;;  %v2002_v46 = vsub.f32 %v1984_v42, %v891_v41 }
 0x2bb   : > { %v2004_v47 = vsub.f32 %v824_v48, %v891_v41  ;;  %v2006_v49 = vsub.f32 %v827_v55, %v891_v41  ;;  %v2008_v50 = vsub.f32 %v832_v56, %v891_v41  ;;  %v2010_v51 = vsub.f32 %v835_v60, %v891_v41 }
 0x2bc   : > { %v2012_v52 = vsub.f32 %v840_v2, %v891_v41  ;;  %v2014_v35 = vsub.f32 %v843_v9, %v891_v41  ;;  %v2016_v37 = vsub.f32 %v848_v10, %v891_v41  ;;  %v2018_v53 = vsub.f32 %v851_v14, %v891_v41 }
 0x2bd   : > { %v2020_v38 = vsub.f32 %v856_v20, %v891_v41  ;;  %v2022_v42 = vsub.f32 %v859_v26, %v891_v41  ;;  %v2024_v48 = vsub.f32 %v864_v27, %v891_v41  ;;  %v2026_v54 = vsub.f32 %v867_v29, %v891_v41 }
 0x2be   : > { %v910_v55 = vmul.f32 0.0, %v1999_v45  ;;  %v924_v56 = vmul.f32 %v1993_v43, %v1993_v43  ;;  %v925_v57 = vmul.f32 %v1996_v44, %v1996_v44  ;;  %v911_v58 = vmul.f32 0.0, %v2002_v46 }
 0x2bf   : > { %v912_v60 = vmul.f32 0.0, %v2004_v47  ;;  %v913_v62 = vmul.f32 0.0, %v2006_v49  ;;  %v914_v1 = vmul.f32 0.0, %v2008_v50  ;;  %v915_v4 = vmul.f32 0.0, %v2010_v51 }
 0x2c0   : > { %v926_v59 = vmul.f32 %v910_v55, %v910_v55  ;;  %v940_v61 = vadd.f32 %v925_v57, %v924_v56  ;;  %v927_v63 = vmul.f32 %v911_v58, %v911_v58  ;;  %v916_v7 = vmul.f32 0.0, %v2012_v52 }
 0x2c1   : > { %v928_v2 = vmul.f32 %v912_v60, %v912_v60  ;;  %v929_v5 = vmul.f32 %v913_v62, %v913_v62  ;;  %v930_v8 = vmul.f32 %v914_v1, %v914_v1  ;;  %v917_v10 = vmul.f32 0.0, %v2014_v35 }
 0x2c2   : > { %v941_v0 = vadd.f32 %v940_v61, %v926_v59  ;;  %v931_v11 = vmul.f32 %v915_v4, %v915_v4  ;;  %v918_v13 = vmul.f32 0.0, %v2016_v37  ;;  %v932_v14 = vmul.f32 %v916_v7, %v916_v7 }
 0x2c3   : > { %v919_v16 = vmul.f32 0.0, %v2018_v53  ;;  %v933_v17 = vmul.f32 %v917_v10, %v917_v10  ;;  %v920_v19 = vmul.f32 0.0, %v2020_v38  ;;  %v921_v22 = vmul.f32 0.0, %v2022_v42 }
 0x2c4   : > { %v942_v3 = vadd.f32 %v941_v0, %v927_v63  ;;  %v934_v20 = vmul.f32 %v918_v13, %v918_v13  ;;  %v922_v25 = vmul.f32 0.0, %v2024_v48  ;;  %v923_v28 = vmul.f32 0.0, %v2026_v54 }
 0x2c5   : > { %v935_v23 = vmul.f32 %v919_v16, %v919_v16  ;;  %v936_v26 = vmul.f32 %v920_v19, %v920_v19  ;;  %v937_v29 = vmul.f32 %v921_v22, %v921_v22 }
 0x2c6   : > { %v943_v6 = vadd.f32 %v942_v3, %v928_v2  ;;  %v938_v31 = vmul.f32 %v922_v25, %v922_v25  ;;  %v939_v33 = vmul.f32 %v923_v28, %v923_v28 }
 0x2c8   : > { %v944_v9 = vadd.f32 %v943_v6, %v929_v5  ;;  %v1241_v5 = vld [vmem:[%s387_s23] ss:$0 sm:$0xff] }
 0x2ca   : > { %v945_v12 = vadd.f32 %v944_v9, %v930_v8 }
 0x2cc   : > { %v946_v15 = vadd.f32 %v945_v12, %v931_v11 }
 0x2ce   : > { %v947_v18 = vadd.f32 %v946_v15, %v932_v14 }
 0x2d0   : > { %v948_v21 = vadd.f32 %v947_v18, %v933_v17 }
 0x2d2   : > { %v949_v24 = vadd.f32 %v948_v21, %v934_v20 }
 0x2d4   : > { %v950_v27 = vadd.f32 %v949_v24, %v935_v23 }
 0x2d6   : > { %v951_v30 = vadd.f32 %v950_v27, %v936_v26 }
 0x2d8   : > { %v952_v32 = vadd.f32 %v951_v30, %v937_v29 }
 0x2da   : > { %v953_v34 = vadd.f32 %v952_v32, %v938_v31 }
 0x2dc   : > { %v954_v36 = vadd.f32 %v953_v34, %v939_v33 }
 0x2de   : > { %v955_v39 = vrot.slane %v954_v36, 4 }
 0x2e0   : > { %v956_v40 = vadd.f32 %v955_v39, %v954_v36 }
 0x2e2   : > { %v957_v41 = vrot.slane %v956_v40, 2 }
 0x2e4   : > { %v958_v55 = vadd.f32 %v957_v41, %v956_v40 }
 0x2e6   : > { %v959_v56 = vrot.slane %v958_v55, 1 }
 0x2e8   : > { %v960_v57 = vadd.f32 %v959_v56, %v958_v55 }
 0x2ea   : > { %v961_v58 = vmul.f32 0.0625, %v960_v57 }
 0x2ec   : > { %v962_v59 = vadd.f32 1e-05, %v961_v58 }
 0x2ee   : > { %1480 = vrsqrt.f32 %v962_v59 }
 0x2f8   : > { %v1481_v60 = vpop.eup %1480 }
 0x2f9   : > { %v964_v61 = vmul.f32 %v1481_v60, %v1993_v43  ;;  %v965_v62 = vmul.f32 %v1481_v60, %v1996_v44  ;;  %v966_v63 = vmul.f32 %v1481_v60, %v1999_v45  ;;  %v967_v0 = vmul.f32 %v1481_v60, %v2002_v46 }
 0x2fa   : > { %v968_v1 = vmul.f32 %v1481_v60, %v2004_v47  ;;  %v969_v2 = vmul.f32 %v1481_v60, %v2006_v49  ;;  %v970_v3 = vmul.f32 %v1481_v60, %v2008_v50  ;;  %v971_v4 = vmul.f32 %v1481_v60, %v2010_v51 }
 0x2fb   : > { %v972_v43 = vmul.f32 %v1481_v60, %v2012_v52  ;;  %v973_v44 = vmul.f32 %v1481_v60, %v2014_v35  ;;  %v974_v45 = vmul.f32 %v1481_v60, %v2016_v37  ;;  %v975_v46 = vmul.f32 %v1481_v60, %v2018_v53  ;;  %v1242_v37 = vld [vmem:[%s390_s11] ss:$0 sm:$0xff] }
 0x2fc   : > { %v976_v47 = vmul.f32 %v1481_v60, %v2020_v38  ;;  %v977_v49 = vmul.f32 %v1481_v60, %v2022_v42  ;;  %v978_v50 = vmul.f32 %v1481_v60, %v2024_v48  ;;  %v979_v51 = vmul.f32 %v1481_v60, %v2026_v54 }
 0x2fd   : > { %v987_v6 = vmul.f32 %v1241_v5, %v964_v61  ;;  %v988_v7 = vmul.f32 %v1241_v5, %v965_v62  ;;  %v989_v8 = vmul.f32 %v1241_v5, %v966_v63  ;;  %v990_v9 = vmul.f32 %v1241_v5, %v967_v0 }
 0x2fe   : > { %v991_v52 = vmul.f32 %v1241_v5, %v968_v1  ;;  %v992_v10 = vmul.f32 %v1241_v5, %v969_v2  ;;  %v993_v11 = vmul.f32 %v1241_v5, %v970_v3  ;;  %v994_v35 = vmul.f32 %v1241_v5, %v971_v4  ;;  %1030 = sbr.rel (%p1243_p0) target bundleno = 783 (0x30f), region = 72 }
 0x2ff   : > { %v995_v53 = vmul.f32 %v1241_v5, %v972_v43  ;;  %v996_v38 = vmul.f32 %v1241_v5, %v973_v44  ;;  %v997_v42 = vmul.f32 %v1241_v5, %v974_v45  ;;  %v998_v12 = vmul.f32 %v1241_v5, %v975_v46 }
 0x300   : > { %v999_v48 = vmul.f32 %v1241_v5, %v976_v47  ;;  %v1000_v13 = vmul.f32 %v1241_v5, %v977_v49  ;;  %v1001_v54 = vmul.f32 %v1241_v5, %v978_v50  ;;  %v1002_v14 = vmul.f32 %v1241_v5, %v979_v51 }
 0x301   : > { %v1010_v15 = vadd.f32 %v1242_v37, %v987_v6  ;;  %v1011_v16 = vadd.f32 %v1242_v37, %v988_v7  ;;  %v1012_v17 = vadd.f32 %v1242_v37, %v989_v8  ;;  %v1013_v18 = vadd.f32 %v1242_v37, %v990_v9 }
 0x302   : > { %v1014_v19 = vadd.f32 %v1242_v37, %v991_v52  ;;  %v1015_v20 = vadd.f32 %v1242_v37, %v992_v10  ;;  %v1016_v21 = vadd.f32 %v1242_v37, %v993_v11  ;;  %v1017_v22 = vadd.f32 %v1242_v37, %v994_v35 }
 0x303   : > { %v1018_v23 = vadd.f32 %v1242_v37, %v995_v53  ;;  %v1019_v24 = vadd.f32 %v1242_v37, %v996_v38  ;;  %v1020_v25 = vadd.f32 %v1242_v37, %v997_v42  ;;  %v1021_v26 = vadd.f32 %v1242_v37, %v998_v12 }
 0x304   : > { %v1022_v27 = vadd.f32 %v1242_v37, %v999_v48  ;;  %v1023_v28 = vadd.f32 %v1242_v37, %v1000_v13  ;;  %v1024_v29 = vadd.f32 %v1242_v37, %v1001_v54  ;;  %v1025_v30 = vadd.f32 %v1242_v37, %v1002_v14 }
 0x305   : > { %v1031_v31 = vmax.f32 %v1010_v15, 0.0  ;;  %v1032_v32 = vmax.f32 %v1011_v16, 0.0  ;;  %v1033_v33 = vmax.f32 %v1012_v17, 0.0  ;;  %v1034_v34 = vmax.f32 %v1013_v18, 0.0 }
 0x306   : > { %v1035_v36 = vmax.f32 %v1014_v19, 0.0  ;;  %v1036_v39 = vmax.f32 %v1015_v20, 0.0  ;;  %v1037_v40 = vmax.f32 %v1016_v21, 0.0  ;;  %v1038_v41 = vmax.f32 %v1017_v22, 0.0 }
 0x307   : > { %v1047_v55 = vpack.c.bf16 %v1032_v32, %v1031_v31  ;;  %v1048_v56 = vpack.c.bf16 %v1034_v34, %v1033_v33  ;;  %v1039_v57 = vmax.f32 %v1018_v23, 0.0  ;;  %v1040_v58 = vmax.f32 %v1019_v24, 0.0 }
 0x308   : > { %v1049_v59 = vpack.c.bf16 %v1036_v39, %v1035_v36  ;;  %v1050_v60 = vpack.c.bf16 %v1038_v41, %v1037_v40  ;;  %v1041_v61 = vmax.f32 %v1020_v25, 0.0  ;;  %v1042_v62 = vmax.f32 %v1021_v26, 0.0 }
 0x309   : > { %1055 = vst [vmem:[#allocation2] sm:$0xff] %v1047_v55  ;;  %1056 = vst [vmem:[#allocation2 + $0x8] sm:$0xff] %v1048_v56  ;;  %v1051_v63 = vpack.c.bf16 %v1040_v58, %v1039_v57  ;;  %v1043_v0 = vmax.f32 %v1022_v27, 0.0  ;;  %v1044_v1 = vmax.f32 %v1023_v28, 0.0  ;;  %v1045_v2 = vmax.f32 %v1024_v29, 0.0 }
 0x30a   : > { %1057 = vst [vmem:[#allocation2 + $0x10] sm:$0xff] %v1049_v59  ;;  %1058 = vst [vmem:[#allocation2 + $0x18] sm:$0xff] %v1050_v60  ;;  %v1052_v3 = vpack.c.bf16 %v1042_v62, %v1041_v61  ;;  %v1046_v4 = vmax.f32 %v1025_v30, 0.0 }
 0x30b   : > { %1059 = vst [vmem:[#allocation2 + $0x20] sm:$0xff] %v1051_v63  ;;  %v1053_v5 = vpack.c.bf16 %v1044_v1, %v1043_v0 }
 0x30c   : > { %1060 = vst [vmem:[#allocation2 + $0x28] sm:$0xff] %v1052_v3  ;;  %v1054_v43 = vpack.c.bf16 %v1046_v4, %v1045_v2 }
 0x30d   : > { %1061 = vst [vmem:[#allocation2 + $0x30] sm:$0xff] %v1053_v5 }
 0x30e   : > { %1062 = vst [vmem:[#allocation2 + $0x38] sm:$0xff] %v1054_v43 }
 0x30f PF: > { %p1244_p8 = scmp.ne.s32.totalorder %s1742_s28, 1 }
 0x310   : > { %1066 = vst [vmem:[#allocation10] sm:$0xff] (!%p1244_p8), %v1010_v15  ;;  %1067 = vst [vmem:[#allocation10 + $0x8] sm:$0xff] (!%p1244_p8), %v1011_v16 }
 0x311   : > { %1065 = sbr.rel (%p1244_p8) target bundleno = 792 (0x318), region = 76  ;;  %1068 = vst [vmem:[#allocation10 + $0x10] sm:$0xff] (!%p1244_p8), %v1012_v17  ;;  %1069 = vst [vmem:[#allocation10 + $0x18] sm:$0xff] (!%p1244_p8), %v1013_v18 }
 0x312   : > { %1070 = vst [vmem:[#allocation10 + $0x20] sm:$0xff] (!%p1244_p8), %v1014_v19  ;;  %1071 = vst [vmem:[#allocation10 + $0x28] sm:$0xff] (!%p1244_p8), %v1015_v20 }
 0x313   : > { %1072 = vst [vmem:[#allocation10 + $0x30] sm:$0xff] (!%p1244_p8), %v1016_v21  ;;  %1073 = vst [vmem:[#allocation10 + $0x38] sm:$0xff] (!%p1244_p8), %v1017_v22 }
 0x314   : > { %1074 = vst [vmem:[#allocation10 + $0x40] sm:$0xff] (!%p1244_p8), %v1018_v23  ;;  %1075 = vst [vmem:[#allocation10 + $0x48] sm:$0xff] (!%p1244_p8), %v1019_v24 }
 0x315   : > { %1076 = vst [vmem:[#allocation10 + $0x50] sm:$0xff] (!%p1244_p8), %v1020_v25  ;;  %1077 = vst [vmem:[#allocation10 + $0x58] sm:$0xff] (!%p1244_p8), %v1021_v26 }
 0x316   : > { %1078 = vst [vmem:[#allocation10 + $0x60] sm:$0xff] (!%p1244_p8), %v1022_v27  ;;  %1079 = vst [vmem:[#allocation10 + $0x68] sm:$0xff] (!%p1244_p8), %v1023_v28 }
 0x317   : > { %1080 = vst [vmem:[#allocation10 + $0x70] sm:$0xff] (!%p1244_p8), %v1024_v29  ;;  %1081 = vst [vmem:[#allocation10 + $0x78] sm:$0xff] (!%p1244_p8), %v1025_v30 }
 0x318 PF: > { %p1421_p2 = scmp.eq.s32.totalorder %s1742_s28, 1  ;;  %s1680_s12 = smov [#allocation10]  }
 0x319   : > { %s1088_s21 = sshll.u32 %s1680_s12, 4  ;;  %s1089_s21 = int_to_ptr.vmem [resolvable:$true] %s1088_s21 }
 0x31a   : > { %s1598_s14 = scalar_lea.vmem %s1089_s21, 2048  ;;  %p1605_p12 = scmp.lt.s32.totalorder %s1089_s21, %s1089_s21 }
 0x31b   : > { %p1599_p4 = scmp.ne.s32.totalorder %s1089_s21, %s1598_s14  ;;  %p1606_p13 = scmp.lt.s32.totalorder %s1598_s14, %s1598_s14 }
 0x31d   : > { %p1600_p7 = pnand %p1599_p4, %p1421_p2  ;;  %p1607_p5 = por %p1606_p13, %p1605_p12 }
 0x31f   : > { %p1601_p11 = pneg %p1600_p7 }
 0x321   : > { %p1608_p10 = pnand %p1607_p5, %p1601_p11 }
 0x323   : > { %1611 = shalt.err (!%p1608_p10)
}
 0x324   : > { %s1612_s20 = scalar_lea.hbm %s2117_s7, 2048 }
 0x325   : > { %p1613_p1 = scmp.ne.s32.totalorder %s2117_s7, %s1612_s20  ;;  %p1618_p6 = scmp.lt.u32.totalorder %s1612_s20, %s2117_s7 }
 0x327   : > { %p1614_p9 = pnand %p1613_p1, %p1421_p2 }
 0x329   : > { %p1615_p3 = pneg %p1614_p9 }
 0x32b   : > { %p1620_p0 = pnand %p1618_p6, %p1615_p3 }
 0x32d   : > { %1623 = shalt.err (!%p1620_p0)
}
 0x32e   : > { %s1681_s10 = smov 128   ;;  %s1682_s11 = smov 8  }
 0x32f   : > { %1399 = dma.vmem_to_hbm [thread:$0]  (%p1421_p2), %s1089_s21, 2048, %s2117_s7, [#allocation5], %s1681_s10, %s1681_s10, %s1682_s11  }
 0x330   : > { %1653 = dma.done.wait (%p1421_p2), [#allocation5], 2048  }
 0x331   : > { %1655 = vsyncadd (%p1421_p2), [#allocation5], 4294965248 }
 0x332 PF: > { %p17_p8 = scmp.ge.s32.totalorder %s1745_s29, 4   ;;  %s2147_s24 = smov %s1662_s25 }
 0x333   : > { %s2148_s25 = smov %s1666_s26  ;;  %s2149_s26 = smov %s1755_s9 }
 0x334   : > { %s2150_s27 = smov %s1745_s29  ;;  %19 = sbr.rel (!%p17_p8) target bundleno = 6 (0x6), region = 124 }
 0x33b   :  { %1104 = vsyncpa [#allocation4], 1 }
 0x33c   :  { %1106 = vsyncpa [#allocation4 + $0x1], 1 }
 0x33d   :  { %1107 = vsyncpa [#allocation7], 1 }
 0x33e   :  { %1108 = vsyncpa [#allocation5], 1 }
 0x33f   :  { %1110 = vsyncpa [#allocation5 + $0x1], 1 }

</bundles_post_ra>
